<compile_context>
chip_gen: v7x
topology: tpu7x:2x2x1
jax: 0.10.0
libtpu: 0.0.40
codegen_flags: <defaults>
</compile_context>

<pallas_src>
import functools
from typing import NamedTuple

import jax
import jax.numpy as jnp
from jax.experimental import pallas as pl
from jax.experimental.pallas import tpu as pltpu

_BLOCK_B = 512        # max batch-tile rows per grid step
_BATCH_ALIGN = 16     # bf16 sublane packing -> batch tiles are multiples of 16
_FEATURE_ALIGN = 128  # lane alignment (use 256-multiple model dims on v6e/v7x)


def _round_up(x, m):
    return ((x + m - 1) // m) * m


def _head_layout(n_actions):
    """Lane layout of the fused mu|sigma head: mu at [0, A), sigma at [off, off+A)."""
    sig_off = 64 if n_actions <= 64 else _round_up(n_actions, _FEATURE_ALIGN)
    head_width = _round_up(sig_off + n_actions, _FEATURE_ALIGN)
    return sig_off, head_width


class ActorParams(NamedTuple):
    """One-time packed parameters (weights bf16, biases f32, fused head)."""
    w1: jax.Array   # (D_pad, F1_pad)  bf16
    b1: jax.Array   # (1, F1_pad)      f32
    w2: jax.Array   # (F1_pad, F2_pad) bf16
    b2: jax.Array   # (1, F2_pad)      f32
    wh: jax.Array   # (F2_pad, HW)     bf16   fused mu|sigma head
    bh: jax.Array   # (1, HW)          f32


def prepare_params(w1, b1, w2, b2, wmu, bmu, wsig, bsig):
    """Hoisted, one-time weight packing: zero-pad, fuse heads, cast to bf16."""
    D, F1 = w1.shape
    F2 = w2.shape[1]
    A = wmu.shape[1]

    D_pad = _round_up(D, _FEATURE_ALIGN)
    F1_pad = _round_up(F1, _FEATURE_ALIGN)
    F2_pad = _round_up(F2, _FEATURE_ALIGN)
    sig_off, HW = _head_layout(A)

    w1p = jnp.zeros((D_pad, F1_pad), jnp.float32).at[:D, :F1].set(w1)
    b1p = jnp.zeros((1, F1_pad), jnp.float32).at[:, :F1].set(b1)
    w2p = jnp.zeros((F1_pad, F2_pad), jnp.float32).at[:F1, :F2].set(w2)
    b2p = jnp.zeros((1, F2_pad), jnp.float32).at[:, :F2].set(b2)

    whp = jnp.zeros((F2_pad, HW), jnp.float32)
    whp = whp.at[:F2, :A].set(wmu).at[:F2, sig_off:sig_off + A].set(wsig)
    bhp = jnp.zeros((1, HW), jnp.float32)
    bhp = bhp.at[:, :A].set(bmu).at[:, sig_off:sig_off + A].set(bsig)

    return ActorParams(w1p.astype(jnp.bfloat16), b1p,
                       w2p.astype(jnp.bfloat16), b2p,
                       whp.astype(jnp.bfloat16), bhp)


def _actor_kernel(sig_off, x_ref, w1_ref, b1_ref, w2_ref, b2_ref,
                  wh_ref, bh_ref, out_ref):
    # x is already bf16; all dots are bf16 MXU inputs with f32 accumulation.
    h1 = jnp.dot(x_ref[...], w1_ref[...], preferred_element_type=jnp.float32)
    h1 = jnp.maximum(h1 + b1_ref[...], 0.0).astype(jnp.bfloat16)

    h2 = jnp.dot(h1, w2_ref[...], preferred_element_type=jnp.float32)
    h2 = jnp.maximum(h2 + b2_ref[...], 0.0).astype(jnp.bfloat16)

    # Fused mu|sigma head: one (TB, HW) matmul, lane-dense output slab.
    heads = (jnp.dot(h2, wh_ref[...], preferred_element_type=jnp.float32)
             + bh_ref[...])

    # sigma lanes get exp(clamp(raw, 1e-6, 2)) (clamp-then-exp, matching the
    # PyTorch module verbatim); mu lanes pass through unchanged.
    lane = jax.lax.broadcasted_iota(jnp.int32, heads.shape, 1)
    sigma = jnp.exp(jnp.clip(heads, 1e-6, 2.0))
    out_ref[...] = jnp.where(lane >= sig_off, sigma, heads).astype(out_ref.dtype)


@functools.partial(jax.jit, static_argnames=("n_actions", "weight_buffers"))
def actor_forward(state, params, *, n_actions, weight_buffers=1):
    """state (B, D) f32 -> (mu, sigma), each (B, n_actions) f32."""
    B, D = state.shape
    D_pad, F1 = params.w1.shape
    F2 = params.w2.shape[1]
    HW = params.wh.shape[1]
    sig_off, hw = _head_layout(n_actions)
    assert hw == HW, "params were packed for a different n_actions"
    assert D <= D_pad

    # Balanced batch tiles; >=2 tiles once B >= 32 so the "parallel" axis can
    # shard across both v7x TensorCores (no-op on single-TC v5e/v6e).
    # NOTE: TB depends on B, so each distinct batch size compiles once.
    n_tiles = max(2 if B >= 2 * _BATCH_ALIGN else 1, pl.cdiv(B, _BLOCK_B))
    TB = _round_up(pl.cdiv(B, n_tiles), _BATCH_ALIGN)
    B_pad = n_tiles * TB

    # State is the only per-step streamed input: pad + cast to bf16 here so the
    # kernel DMAs half the bytes and skips a per-step VPU cast.
    state_p = jnp.pad(state, ((0, B_pad - B), (0, D_pad - D))).astype(jnp.bfloat16)

    # Explicit VMEM budget from the actual resident footprint (+ headroom),
    # instead of relying on the scoped default (16/32 MiB).
    weight_bytes = sum(int(a.size) * a.dtype.itemsize
                       for a in (params.w1, params.b1, params.w2, params.b2,
                                 params.wh, params.bh))
    streamed_bytes = 2 * (TB * D_pad * 2 + TB * HW * 4)  # double-buffered x + out
    vmem_limit = int(max(32 << 20,
                         min(64 << 20,
                             2 * (weight_buffers * weight_bytes + streamed_bytes)
                             + (4 << 20))))

    def w_spec(shape):
        if weight_buffers == 1:
            # Constant (index_map -> (0,0)) blocks: single VMEM buffer; no
            # pointless double-buffering of resident weights.
            return pl.BlockSpec(shape, lambda i: (0, 0),
                                pipeline_mode=pl.Buffered(buffer_count=1))
        return pl.BlockSpec(shape, lambda i: (0, 0))

    out = pl.pallas_call(
        functools.partial(_actor_kernel, sig_off),
        out_shape=jax.ShapeDtypeStruct((B_pad, HW), jnp.float32),
        grid=(n_tiles,),
        in_specs=[
            pl.BlockSpec((TB, D_pad), lambda i: (i, 0)),   # streamed state tile
            w_spec((D_pad, F1)),                           # w1 (VMEM-resident)
            w_spec((1, F1)),                               # b1
            w_spec((F1, F2)),                              # w2
            w_spec((1, F2)),                               # b2
            w_spec((F2, HW)),                              # fused head W
            w_spec((1, HW)),                               # fused head b
        ],
        out_specs=pl.BlockSpec((TB, HW), lambda i: (i, 0)),
        compiler_params=pltpu.CompilerParams(
            dimension_semantics=("parallel",),
            vmem_limit_bytes=vmem_limit),
    )(state_p, params.w1, params.b1, params.w2, params.b2, params.wh, params.bh)

    mu = out[:B, :n_actions]
    sigma = out[:B, sig_off:sig_off + n_actions]
    return mu, sigma


_WEIGHT_BUFFERS = [1]


def run_actor(state, params, n_actions):
    """Forward with graceful fallback to default double-buffering if this JAX
    build rejects pipeline_mode=pl.Buffered(1) in the classic TPU pipeline."""
    try:
        return actor_forward(state, params, n_actions=n_actions,
                             weight_buffers=_WEIGHT_BUFFERS[0])
    except Exception:
        if _WEIGHT_BUFFERS[0] != 1:
            raise
        _WEIGHT_BUFFERS[0] = 2
        return actor_forward(state, params, n_actions=n_actions,
                             weight_buffers=2)


def init_params(key, input_dims, fc1_dims, fc2_dims, n_actions):
    """nn.Linear-style init (uniform +-1/sqrt(fan_in)); weights stored (in, out)."""
    ks = jax.random.split(key, 8)

    def lin(kw, kb, fan_in, fan_out):
        bound = 1.0 / jnp.sqrt(fan_in)
        w = jax.random.uniform(kw, (fan_in, fan_out), jnp.float32, -bound, bound)
        b = jax.random.uniform(kb, (1, fan_out), jnp.float32, -bound, bound)
        return w, b

    w1, b1 = lin(ks[0], ks[1], input_dims, fc1_dims)
    w2, b2 = lin(ks[2], ks[3], fc1_dims, fc2_dims)
    wmu, bmu = lin(ks[4], ks[5], fc2_dims, n_actions)
    wsig, bsig = lin(ks[6], ks[7], fc2_dims, n_actions)
    return w1, b1, w2, b2, wmu, bmu, wsig, bsig


def ref_forward(state, w1, b1, w2, b2, wmu, bmu, wsig, bsig):
    """Pure-JAX reference with the same bf16-input / f32-accumulate dots."""
    bf = jnp.bfloat16
    h1 = jnp.maximum(jnp.dot(state.astype(bf), w1.astype(bf),
                             preferred_element_type=jnp.float32) + b1, 0.0)
    h2 = jnp.maximum(jnp.dot(h1.astype(bf), w2.astype(bf),
                             preferred_element_type=jnp.float32) + b2, 0.0)
    mu = jnp.dot(h2.astype(bf), wmu.astype(bf),
                 preferred_element_type=jnp.float32) + bmu
    raw = jnp.dot(h2.astype(bf), wsig.astype(bf),
                  preferred_element_type=jnp.float32) + bsig
    sigma = jnp.exp(jnp.clip(raw, 1e-6, 2.0))   # clamp-then-exp, as in PyTorch
    return mu, sigma


if __name__ == "__main__":
    key = jax.random.PRNGKey(0)
    k_params, k_s1, k_s2 = jax.random.split(key, 3)

    batch = 4
    input_dims = 16      # state dimension
    fc1_dims = 256       # 256-aligned: fills v6e/v7x MXU, still 128-aligned for v5e
    fc2_dims = 256
    n_actions = 2
    # max_action is only used in sample_normal (action squashing), not forward.

    raw_params = init_params(k_params, input_dims, fc1_dims, fc2_dims, n_actions)
    packed = prepare_params(*raw_params)   # one-time packing, hoisted out of forward

    # Small batch (single grid step).
    state = jax.random.normal(k_s1, (batch, input_dims), dtype=jnp.float32)
    mu, sigma = run_actor(state, packed, n_actions)
    mu, sigma = jax.block_until_ready((mu, sigma))
    mu_ref, sigma_ref = ref_forward(state, *raw_params)
    assert mu.shape == (batch, n_actions)
    assert sigma.shape == (batch, n_actions)
    assert jnp.allclose(mu, mu_ref, atol=2e-3, rtol=2e-3)
    assert jnp.allclose(sigma, sigma_ref, atol=2e-3, rtol=2e-3)
    assert bool(jnp.all(sigma > 0.0))

    # Larger, oddly-sized batch exercises the multi-tile (>=2 grid steps) path.
    state2 = jax.random.normal(k_s2, (37, input_dims), dtype=jnp.float32)
    mu2, sigma2 = run_actor(state2, packed, n_actions)
    mu2, sigma2 = jax.block_until_ready((mu2, sigma2))
    mu2_ref, sigma2_ref = ref_forward(state2, *raw_params)
    assert mu2.shape == (37, n_actions)
    assert jnp.allclose(mu2, mu2_ref, atol=2e-3, rtol=2e-3)
    assert jnp.allclose(sigma2, sigma2_ref, atol=2e-3, rtol=2e-3)
    assert bool(jnp.all(sigma2 > 0.0))

    print("KERNEL_OK")
</pallas_src>

<mosaic_0001>
module attributes {stable_mosaic.version = 11 : i64} {
  func.func @_actor_kernel(%arg0: i32, %arg1: memref<16x128xbf16, #tpu.memory_space<vmem>>, %arg2: memref<128x256xbf16, #tpu.memory_space<vmem>>, %arg3: memref<1x256xf32, #tpu.memory_space<vmem>>, %arg4: memref<256x256xbf16, #tpu.memory_space<vmem>>, %arg5: memref<1x256xf32, #tpu.memory_space<vmem>>, %arg6: memref<256x128xbf16, #tpu.memory_space<vmem>>, %arg7: memref<1x128xf32, #tpu.memory_space<vmem>>, %arg8: memref<16x128xf32, #tpu.memory_space<vmem>>) attributes {dimension_semantics = [#tpu.dimension_semantics<parallel>], iteration_bounds = array<i64: 1>, scalar_prefetch = 0 : i64, scratch_operands = 0 : i64, tpu.core_type = #tpu.core_type<tc>, window_params = [{transform_indices = @transform_0, window_bounds = array<i64: 16, 128>}, {pipeline_mode = #tpu.pipeline_mode<synchronous>, transform_indices = @transform_1, window_bounds = array<i64: 128, 256>}, {pipeline_mode = #tpu.pipeline_mode<synchronous>, transform_indices = @transform_2, window_bounds = array<i64: 1, 256>}, {pipeline_mode = #tpu.pipeline_mode<synchronous>, transform_indices = @transform_3, window_bounds = array<i64: 256, 256>}, {pipeline_mode = #tpu.pipeline_mode<synchronous>, transform_indices = @transform_4, window_bounds = array<i64: 1, 256>}, {pipeline_mode = #tpu.pipeline_mode<synchronous>, transform_indices = @transform_5, window_bounds = array<i64: 256, 128>}, {pipeline_mode = #tpu.pipeline_mode<synchronous>, transform_indices = @transform_6, window_bounds = array<i64: 1, 128>}, {transform_indices = @transform_7, window_bounds = array<i64: 16, 128>}]} {
    %c0 = arith.constant 0 : index
    %c0_0 = arith.constant 0 : index
    %0 = vector.load %arg1[%c0, %c0_0] : memref<16x128xbf16, #tpu.memory_space<vmem>>, vector<16x128xbf16>
    %c0_1 = arith.constant 0 : index
    %c0_2 = arith.constant 0 : index
    %1 = vector.load %arg2[%c0_1, %c0_2] : memref<128x256xbf16, #tpu.memory_space<vmem>>, vector<128x256xbf16>
    %cst = arith.constant dense<0.000000e+00> : vector<16x256xf32>
    %2 = tpu.matmul %0, %1, %cst {dimension_numbers = #tpu.dot_dimension_numbers<[1], [0], [0], [1], [0, 0, 1, 1], [], []>} : vector<16x128xbf16>, vector<128x256xbf16>, vector<16x256xf32> -> vector<16x256xf32>
    %c0_3 = arith.constant 0 : index
    %c0_4 = arith.constant 0 : index
    %3 = vector.load %arg3[%c0_3, %c0_4] : memref<1x256xf32, #tpu.memory_space<vmem>>, vector<1x256xf32>
    %4 = vector.broadcast %3 : vector<1x256xf32> to vector<16x256xf32>
    %5 = arith.addf %2, %4 : vector<16x256xf32>
    %cst_5 = arith.constant 0.000000e+00 : f32
    %6 = vector.broadcast %cst_5 : f32 to vector<16x256xf32>
    %7 = arith.maximumf %5, %6 : vector<16x256xf32>
    %8 = arith.truncf %7 : vector<16x256xf32> to vector<16x256xbf16>
    %c0_6 = arith.constant 0 : index
    %c0_7 = arith.constant 0 : index
    %9 = vector.load %arg4[%c0_6, %c0_7] : memref<256x256xbf16, #tpu.memory_space<vmem>>, vector<256x256xbf16>
    %cst_8 = arith.constant dense<0.000000e+00> : vector<16x256xf32>
    %10 = tpu.matmul %8, %9, %cst_8 {dimension_numbers = #tpu.dot_dimension_numbers<[1], [0], [0], [1], [0, 0, 1, 1], [], []>} : vector<16x256xbf16>, vector<256x256xbf16>, vector<16x256xf32> -> vector<16x256xf32>
    %c0_9 = arith.constant 0 : index
    %c0_10 = arith.constant 0 : index
    %11 = vector.load %arg5[%c0_9, %c0_10] : memref<1x256xf32, #tpu.memory_space<vmem>>, vector<1x256xf32>
    %12 = vector.broadcast %11 : vector<1x256xf32> to vector<16x256xf32>
    %13 = arith.addf %10, %12 : vector<16x256xf32>
    %cst_11 = arith.constant 0.000000e+00 : f32
    %14 = vector.broadcast %cst_11 : f32 to vector<16x256xf32>
    %15 = arith.maximumf %13, %14 : vector<16x256xf32>
    %16 = arith.truncf %15 : vector<16x256xf32> to vector<16x256xbf16>
    %c0_12 = arith.constant 0 : index
    %c0_13 = arith.constant 0 : index
    %17 = vector.load %arg6[%c0_12, %c0_13] : memref<256x128xbf16, #tpu.memory_space<vmem>>, vector<256x128xbf16>
    %cst_14 = arith.constant dense<0.000000e+00> : vector<16x128xf32>
    %18 = tpu.matmul %16, %17, %cst_14 {dimension_numbers = #tpu.dot_dimension_numbers<[1], [0], [0], [1], [0, 0, 1, 1], [], []>} : vector<16x256xbf16>, vector<256x128xbf16>, vector<16x128xf32> -> vector<16x128xf32>
    %c0_15 = arith.constant 0 : index
    %c0_16 = arith.constant 0 : index
    %19 = vector.load %arg7[%c0_15, %c0_16] : memref<1x128xf32, #tpu.memory_space<vmem>>, vector<1x128xf32>
    %20 = vector.broadcast %19 : vector<1x128xf32> to vector<16x128xf32>
    %21 = arith.addf %18, %20 : vector<16x128xf32>
    %22 = tpu.iota {dimensions = array<i32: 1>} : vector<16x128xi32>
    %cst_17 = arith.constant 9.99999997E-7 : f32
    %cst_18 = arith.constant 2.000000e+00 : f32
    %23 = vector.broadcast %cst_17 : f32 to vector<16x128xf32>
    %24 = arith.maximumf %23, %21 : vector<16x128xf32>
    %25 = vector.broadcast %cst_18 : f32 to vector<16x128xf32>
    %26 = arith.minimumf %25, %24 : vector<16x128xf32>
    %27 = math.exp %26 : vector<16x128xf32>
    %c64_i32 = arith.constant 64 : i32
    %28 = vector.broadcast %c64_i32 : i32 to vector<16x128xi32>
    %29 = arith.cmpi sge, %22, %28 : vector<16x128xi32>
    %30 = arith.select %29, %27, %21 : vector<16x128xi1>, vector<16x128xf32>
    %c0_19 = arith.constant 0 : index
    %c0_20 = arith.constant 0 : index
    %31 = vector.load %arg8[%c0_19, %c0_20] : memref<16x128xf32, #tpu.memory_space<vmem>>, vector<16x128xf32>
    tpu.vector_store %arg8[%c0_19, %c0_20], %30 {strides = array<i32>} : memref<16x128xf32, #tpu.memory_space<vmem>>, vector<16x128xf32>,
    return
  }
  func.func @transform_0(%arg0: i32) -> (i32, i32) {
    %c0_i32 = arith.constant 0 : i32
    %c0_i32_0 = arith.constant 0 : i32
    return %arg0, %c0_i32 : i32, i32
  }
  func.func @transform_1(%arg0: i32) -> (i32, i32) {
    %c0_i32 = arith.constant 0 : i32
    %c0_i32_0 = arith.constant 0 : i32
    %c0_i32_1 = arith.constant 0 : i32
    return %c0_i32, %c0_i32_0 : i32, i32
  }
  func.func @transform_2(%arg0: i32) -> (i32, i32) {
    %c0_i32 = arith.constant 0 : i32
    %c0_i32_0 = arith.constant 0 : i32
    %c0_i32_1 = arith.constant 0 : i32
    return %c0_i32, %c0_i32_0 : i32, i32
  }
  func.func @transform_3(%arg0: i32) -> (i32, i32) {
    %c0_i32 = arith.constant 0 : i32
    %c0_i32_0 = arith.constant 0 : i32
    %c0_i32_1 = arith.constant 0 : i32
    return %c0_i32, %c0_i32_0 : i32, i32
  }
  func.func @transform_4(%arg0: i32) -> (i32, i32) {
    %c0_i32 = arith.constant 0 : i32
    %c0_i32_0 = arith.constant 0 : i32
    %c0_i32_1 = arith.constant 0 : i32
    return %c0_i32, %c0_i32_0 : i32, i32
  }
  func.func @transform_5(%arg0: i32) -> (i32, i32) {
    %c0_i32 = arith.constant 0 : i32
    %c0_i32_0 = arith.constant 0 : i32
    %c0_i32_1 = arith.constant 0 : i32
    return %c0_i32, %c0_i32_0 : i32, i32
  }
  func.func @transform_6(%arg0: i32) -> (i32, i32) {
    %c0_i32 = arith.constant 0 : i32
    %c0_i32_0 = arith.constant 0 : i32
    %c0_i32_1 = arith.constant 0 : i32
    return %c0_i32, %c0_i32_0 : i32, i32
  }
  func.func @transform_7(%arg0: i32) -> (i32, i32) {
    %c0_i32 = arith.constant 0 : i32
    %c0_i32_0 = arith.constant 0 : i32
    return %arg0, %c0_i32 : i32, i32
  }
}

module attributes {stable_mosaic.version = 11 : i64} {
  func.func @_actor_kernel(%arg0: i32, %arg1: memref<16x128xbf16, #tpu.memory_space<vmem>>, %arg2: memref<128x256xbf16, #tpu.memory_space<vmem>>, %arg3: memref<1x256xf32, #tpu.memory_space<vmem>>, %arg4: memref<256x256xbf16, #tpu.memory_space<vmem>>, %arg5: memref<1x256xf32, #tpu.memory_space<vmem>>, %arg6: memref<256x128xbf16, #tpu.memory_space<vmem>>, %arg7: memref<1x128xf32, #tpu.memory_space<vmem>>, %arg8: memref<16x128xf32, #tpu.memory_space<vmem>>) attributes {dimension_semantics = [#tpu.dimension_semantics<parallel>], iteration_bounds = array<i64: 1>, scalar_prefetch = 0 : i64, scratch_operands = 0 : i64, tpu.core_type = #tpu.core_type<tc>, window_params = [{transform_indices = @transform_0, window_bounds = array<i64: 16, 128>}, {pipeline_mode = #tpu.pipeline_mode<synchronous>, transform_indices = @transform_1, window_bounds = array<i64: 128, 256>}, {pipeline_mode = #tpu.pipeline_mode<synchronous>, transform_indices = @transform_2, window_bounds = array<i64: 1, 256>}, {pipeline_mode = #tpu.pipeline_mode<synchronous>, transform_indices = @transform_3, window_bounds = array<i64: 256, 256>}, {pipeline_mode = #tpu.pipeline_mode<synchronous>, transform_indices = @transform_4, window_bounds = array<i64: 1, 256>}, {pipeline_mode = #tpu.pipeline_mode<synchronous>, transform_indices = @transform_5, window_bounds = array<i64: 256, 128>}, {pipeline_mode = #tpu.pipeline_mode<synchronous>, transform_indices = @transform_6, window_bounds = array<i64: 1, 128>}, {transform_indices = @transform_7, window_bounds = array<i64: 16, 128>}]} {
    %c0 = arith.constant 0 : index
    %c0_0 = arith.constant 0 : index
    %0 = vector.load %arg1[%c0, %c0_0] : memref<16x128xbf16, #tpu.memory_space<vmem>>, vector<16x128xbf16>
    %c0_1 = arith.constant 0 : index
    %c0_2 = arith.constant 0 : index
    %1 = vector.load %arg2[%c0_1, %c0_2] : memref<128x256xbf16, #tpu.memory_space<vmem>>, vector<128x256xbf16>
    %cst = arith.constant dense<0.000000e+00> : vector<16x256xf32>
    %2 = tpu.matmul %0, %1, %cst {dimension_numbers = #tpu.dot_dimension_numbers<[1], [0], [0], [1], [0, 0, 1, 1], [], []>} : vector<16x128xbf16>, vector<128x256xbf16>, vector<16x256xf32> -> vector<16x256xf32>
    %c0_3 = arith.constant 0 : index
    %c0_4 = arith.constant 0 : index
    %3 = vector.load %arg3[%c0_3, %c0_4] : memref<1x256xf32, #tpu.memory_space<vmem>>, vector<1x256xf32>
    %4 = vector.broadcast %3 : vector<1x256xf32> to vector<16x256xf32>
    %5 = arith.addf %2, %4 : vector<16x256xf32>
    %cst_5 = arith.constant 0.000000e+00 : f32
    %6 = vector.broadcast %cst_5 : f32 to vector<16x256xf32>
    %7 = arith.maximumf %5, %6 : vector<16x256xf32>
    %8 = arith.truncf %7 : vector<16x256xf32> to vector<16x256xbf16>
    %c0_6 = arith.constant 0 : index
    %c0_7 = arith.constant 0 : index
    %9 = vector.load %arg4[%c0_6, %c0_7] : memref<256x256xbf16, #tpu.memory_space<vmem>>, vector<256x256xbf16>
    %cst_8 = arith.constant dense<0.000000e+00> : vector<16x256xf32>
    %10 = tpu.matmul %8, %9, %cst_8 {dimension_numbers = #tpu.dot_dimension_numbers<[1], [0], [0], [1], [0, 0, 1, 1], [], []>} : vector<16x256xbf16>, vector<256x256xbf16>, vector<16x256xf32> -> vector<16x256xf32>
    %c0_9 = arith.constant 0 : index
    %c0_10 = arith.constant 0 : index
    %11 = vector.load %arg5[%c0_9, %c0_10] : memref<1x256xf32, #tpu.memory_space<vmem>>, vector<1x256xf32>
    %12 = vector.broadcast %11 : vector<1x256xf32> to vector<16x256xf32>
    %13 = arith.addf %10, %12 : vector<16x256xf32>
    %cst_11 = arith.constant 0.000000e+00 : f32
    %14 = vector.broadcast %cst_11 : f32 to vector<16x256xf32>
    %15 = arith.maximumf %13, %14 : vector<16x256xf32>
    %16 = arith.truncf %15 : vector<16x256xf32> to vector<16x256xbf16>
    %c0_12 = arith.constant 0 : index
    %c0_13 = arith.constant 0 : index
    %17 = vector.load %arg6[%c0_12, %c0_13] : memref<256x128xbf16, #tpu.memory_space<vmem>>, vector<256x128xbf16>
    %cst_14 = arith.constant dense<0.000000e+00> : vector<16x128xf32>
    %18 = tpu.matmul %16, %17, %cst_14 {dimension_numbers = #tpu.dot_dimension_numbers<[1], [0], [0], [1], [0, 0, 1, 1], [], []>} : vector<16x256xbf16>, vector<256x128xbf16>, vector<16x128xf32> -> vector<16x128xf32>
    %c0_15 = arith.constant 0 : index
    %c0_16 = arith.constant 0 : index
    %19 = vector.load %arg7[%c0_15, %c0_16] : memref<1x128xf32, #tpu.memory_space<vmem>>, vector<1x128xf32>
    %20 = vector.broadcast %19 : vector<1x128xf32> to vector<16x128xf32>
    %21 = arith.addf %18, %20 : vector<16x128xf32>
    %22 = tpu.iota {dimensions = array<i32: 1>} : vector<16x128xi32>
    %cst_17 = arith.constant 9.99999997E-7 : f32
    %cst_18 = arith.constant 2.000000e+00 : f32
    %23 = vector.broadcast %cst_17 : f32 to vector<16x128xf32>
    %24 = arith.maximumf %23, %21 : vector<16x128xf32>
    %25 = vector.broadcast %cst_18 : f32 to vector<16x128xf32>
    %26 = arith.minimumf %25, %24 : vector<16x128xf32>
    %27 = math.exp %26 : vector<16x128xf32>
    %c64_i32 = arith.constant 64 : i32
    %28 = vector.broadcast %c64_i32 : i32 to vector<16x128xi32>
    %29 = arith.cmpi sge, %22, %28 : vector<16x128xi32>
    %30 = arith.select %29, %27, %21 : vector<16x128xi1>, vector<16x128xf32>
    %c0_19 = arith.constant 0 : index
    %c0_20 = arith.constant 0 : index
    %31 = vector.load %arg8[%c0_19, %c0_20] : memref<16x128xf32, #tpu.memory_space<vmem>>, vector<16x128xf32>
    tpu.vector_store %arg8[%c0_19, %c0_20], %30 {strides = array<i32>} : memref<16x128xf32, #tpu.memory_space<vmem>>, vector<16x128xf32>,
    return
  }
  func.func @transform_0(%arg0: i32) -> (i32, i32) {
    %c0_i32 = arith.constant 0 : i32
    %c0_i32_0 = arith.constant 0 : i32
    return %arg0, %c0_i32 : i32, i32
  }
  func.func @transform_1(%arg0: i32) -> (i32, i32) {
    %c0_i32 = arith.constant 0 : i32
    %c0_i32_0 = arith.constant 0 : i32
    %c0_i32_1 = arith.constant 0 : i32
    return %c0_i32, %c0_i32_0 : i32, i32
  }
  func.func @transform_2(%arg0: i32) -> (i32, i32) {
    %c0_i32 = arith.constant 0 : i32
    %c0_i32_0 = arith.constant 0 : i32
    %c0_i32_1 = arith.constant 0 : i32
    return %c0_i32, %c0_i32_0 : i32, i32
  }
  func.func @transform_3(%arg0: i32) -> (i32, i32) {
    %c0_i32 = arith.constant 0 : i32
    %c0_i32_0 = arith.constant 0 : i32
    %c0_i32_1 = arith.constant 0 : i32
    return %c0_i32, %c0_i32_0 : i32, i32
  }
  func.func @transform_4(%arg0: i32) -> (i32, i32) {
    %c0_i32 = arith.constant 0 : i32
    %c0_i32_0 = arith.constant 0 : i32
    %c0_i32_1 = arith.constant 0 : i32
    return %c0_i32, %c0_i32_0 : i32, i32
  }
  func.func @transform_5(%arg0: i32) -> (i32, i32) {
    %c0_i32 = arith.constant 0 : i32
    %c0_i32_0 = arith.constant 0 : i32
    %c0_i32_1 = arith.constant 0 : i32
    return %c0_i32, %c0_i32_0 : i32, i32
  }
  func.func @transform_6(%arg0: i32) -> (i32, i32) {
    %c0_i32 = arith.constant 0 : i32
    %c0_i32_0 = arith.constant 0 : i32
    %c0_i32_1 = arith.constant 0 : i32
    return %c0_i32, %c0_i32_0 : i32, i32
  }
  func.func @transform_7(%arg0: i32) -> (i32, i32) {
    %c0_i32 = arith.constant 0 : i32
    %c0_i32_0 = arith.constant 0 : i32
    return %arg0, %c0_i32 : i32, i32
  }
}

</mosaic_0001>

<bundles_post_ra>
// kernel: actor_forward.1
= control target key start
LH: loop header
LB: loop body
LE: loop exit
PB: predicated region body
PF: predicated region fallthrough
CT: control target
= control target key end

     0   :  { %12 = vsyncpa [#allocation3], 0  ;;  %s1053_s0 = inlined_call_operand.vmem [shape: bf16[16,128], index: 0, kind: input, shape index: {}]   ;;  %s1054_s1 = inlined_call_operand.hbm [shape: bf16[128,256], index: 1, kind: input, shape index: {}]   ;;  %s1055_s2 = inlined_call_operand.vmem [shape: f32[1,256], index: 2, kind: input, shape index: {}]   ;;  %s1056_s3 = inlined_call_operand.hbm [shape: bf16[256,256], index: 3, kind: input, shape index: {}]   ;;  %s1057_s4 = inlined_call_operand.vmem [shape: f32[1,256], index: 4, kind: input, shape index: {}]   ;;  %s1058_s5 = inlined_call_operand.hbm [shape: bf16[256,128], index: 5, kind: input, shape index: {}]   ;;  %s1059_s6 = inlined_call_operand.vmem [shape: f32[1,128], index: 6, kind: input, shape index: {}]   ;;  %s1060_s7 = inlined_call_operand.vmem [shape: f32[16,128], index: 7, kind: output, shape index: {}]  }
   0x1   :  { %13 = vsyncpa [#allocation5], 0  ;;  %s942_s24 = smov [#allocation4]   ;;  %s943_s26 = smov [#allocation2]  }
   0x2   :  { %s35_s25 = sshll.u32 %s942_s24, 4  ;;  %s21_s27 = sshll.u32 %s943_s26, 4  ;;  %s36_s25 = int_to_ptr.vmem [resolvable:$true] %s35_s25  ;;  %s990_s27 = int_to_ptr.vmem [resolvable:$true] %s21_s27 }
   0x3   :  { %s872_s30 = scalar_lea.hbm %s1056_s3, 4096 }
   0x4   :  { %p873_p0 = scmp.ne.s32.totalorder %s1056_s3, %s872_s30  ;;  %p876_p1 = scmp.lt.u32.totalorder %s872_s30, %s1056_s3 }
   0x6   :  { %p878_p2 = pnand %p876_p1, %p873_p0 }
   0x8   :  { %881 = shalt.err (!%p878_p2)
}
   0x9   :  { %s882_s12 = scalar_lea.vmem %s36_s25, 4096  ;;  %p887_p4 = scmp.lt.s32.totalorder %s36_s25, %s36_s25 }
   0xa   :  { %p883_p3 = scmp.ne.s32.totalorder %s36_s25, %s882_s12  ;;  %p888_p5 = scmp.lt.s32.totalorder %s882_s12, %s882_s12 }
   0xc   :  { %p889_p6 = por %p888_p5, %p887_p4 }
   0xe   :  { %p890_p7 = pnand %p889_p6, %p883_p3 }
  0x10   :  { %893 = shalt.err (!%p890_p7)
}
  0x11   :  { %s944_s13 = smov 128   ;;  %s945_s14 = smov 8  }
  0x12   :  { %41 = dma.hbm_to_vmem [thread:$0]  %s1056_s3, 4096, %s36_s25, [#allocation5], %s944_s13, %s944_s13, %s945_s14  }
  0x13   :  { %s894_s19 = scalar_lea.hbm %s1054_s1, 2048 }
  0x14   :  { %p895_p8 = scmp.ne.s32.totalorder %s1054_s1, %s894_s19  ;;  %p898_p9 = scmp.lt.u32.totalorder %s894_s19, %s1054_s1 }
  0x16   :  { %p900_p10 = pnand %p898_p9, %p895_p8 }
  0x18   :  { %903 = shalt.err (!%p900_p10)
}
  0x19   :  { %s904_s24 = scalar_lea.vmem %s990_s27, 2048  ;;  %p909_p12 = scmp.lt.s32.totalorder %s990_s27, %s990_s27 }
  0x1a   :  { %p905_p11 = scmp.ne.s32.totalorder %s990_s27, %s904_s24  ;;  %p910_p13 = scmp.lt.s32.totalorder %s904_s24, %s904_s24 }
  0x1c   :  { %p911_p0 = por %p910_p13, %p909_p12 }
  0x1e   :  { %p912_p1 = pnand %p911_p0, %p905_p11 }
  0x20   :  { %915 = shalt.err (!%p912_p1)
}
  0x21   :  { %27 = dma.hbm_to_vmem [thread:$0]  %s1054_s1, 2048, %s990_s27, [#allocation3], %s944_s13, %s944_s13, %s945_s14  }
  0x22   :  { %s946_s26 = smov [#allocation6]   ;;  %s916_s8 = scalar_lea.hbm %s1058_s5, 2048 }
  0x23   :  { %s49_s28 = sshll.u32 %s946_s26, 4  ;;  %p917_p2 = scmp.ne.s32.totalorder %s1058_s5, %s916_s8  ;;  %s50_s28 = int_to_ptr.vmem [resolvable:$true] %s49_s28 }
  0x24   :  { %p920_p3 = scmp.lt.u32.totalorder %s916_s8, %s1058_s5 }
  0x26   :  { %p922_p4 = pnand %p920_p3, %p917_p2 }
  0x28   :  { %925 = shalt.err (!%p922_p4)
}
  0x29   :  { %s926_s15 = scalar_lea.vmem %s50_s28, 2048  ;;  %p931_p6 = scmp.lt.s32.totalorder %s50_s28, %s50_s28 }
  0x2a   :  { %p927_p5 = scmp.ne.s32.totalorder %s50_s28, %s926_s15  ;;  %p932_p7 = scmp.lt.s32.totalorder %s926_s15, %s926_s15 }
  0x2c   :  { %p933_p8 = por %p932_p7, %p931_p6 }
  0x2e   :  { %p934_p9 = pnand %p933_p8, %p927_p5 }
  0x30   :  { %937 = shalt.err (!%p934_p9)
}
  0x31   :  { %s947_s1 = smov 64   ;;  %s948_s27 = smov 4  }
  0x32   :  { %55 = dma.hbm_to_vmem [thread:$0]  %s1058_s5, 2048, %s50_s28, [#allocation5], %s947_s1, %s947_s1, %s948_s27  }
  0x33   :  { %938 = dma.done.wait [#allocation3], 2048  }
  0x34   :  { %939 = vsyncadd [#allocation3], 4294965248 }
  0x35   :  { %940 = dma.done.wait [#allocation5], 6144  }
  0x36   :  { %941 = vsyncadd [#allocation5], 4294961152  ;;  %v949_v0 = vmov 0   ;;  %v779_v1 = vld [vmem:[#allocation2 + $0x4] ss:$8 sps:$4 sm:$0xff]   ;;  %v856_v54 = vld [vmem:[#allocation6 + $0x50] sm:$0xff]   ;;  %v88_v61 = vlaneseq }
  0x37   :  { %216 = vmatprep.mubr.bf16.mxu0 %v949_v0  ;;  %v781_v2 = vld [vmem:[#allocation2] ss:$8 sps:$4 sm:$0xff]   ;;  %184 = vmatprep.subr.bf16.mxu0 %v779_v1  ;;  %v782_v3 = vld [vmem:[#allocation2 + $0x14] ss:$8 sps:$4 sm:$0xff]   ;;  %v784_v4 = vld [vmem:[#allocation2 + $0x10] ss:$8 sps:$4 sm:$0xff]  }
  0x38   :  { %185 = vmatpush1.bf16.msra.mxu0 %v781_v2  ;;  %v785_v5 = vld [vmem:[#allocation2 + $0x24] ss:$8 sps:$4 sm:$0xff]   ;;  %v787_v6 = vld [vmem:[#allocation2 + $0x20] ss:$8 sps:$4 sm:$0xff]   ;;  %v788_v7 = vld [vmem:[#allocation2 + $0x34] ss:$8 sps:$4 sm:$0xff]  }
  0x39   :  { %186 = vmatprep.subr.bf16.mxu0 %v782_v3  ;;  %v790_v8 = vld [vmem:[#allocation2 + $0x30] ss:$8 sps:$4 sm:$0xff]   ;;  %v791_v9 = vld [vmem:[#allocation2 + $0x44] ss:$8 sps:$4 sm:$0xff]   ;;  %v806_v11 = vld [vmem:[#allocation4] ss:$8 sps:$4 sm:$0xff]  }
  0x3a   :  { %v804_v10 = vld [vmem:[#allocation4 + $0x4] ss:$8 sps:$4 sm:$0xff]   ;;  %v807_v12 = vld [vmem:[#allocation4 + $0x14] ss:$8 sps:$4 sm:$0xff]   ;;  %v793_v13 = vld [vmem:[#allocation2 + $0x40] ss:$8 sps:$4 sm:$0xff]  }
  0x3b   :  { %437 = vmatprep.subr.bf16.mxu1 %v804_v10  ;;  %v809_v14 = vld [vmem:[#allocation4 + $0x10] ss:$8 sps:$4 sm:$0xff]   ;;  %v794_v15 = vld [vmem:[#allocation2 + $0x54] ss:$8 sps:$4 sm:$0xff]   ;;  %v810_v16 = vld [vmem:[#allocation4 + $0x24] ss:$8 sps:$4 sm:$0xff]  }
  0x3c   :  { %187 = vmatpush1.bf16.msra.mxu0 %v784_v4  ;;  %438 = vmatpush1.bf16.msra.mxu1 %v806_v11  ;;  %v796_v17 = vld [vmem:[#allocation2 + $0x50] ss:$8 sps:$4 sm:$0xff]   ;;  %v812_v18 = vld [vmem:[#allocation4 + $0x20] ss:$8 sps:$4 sm:$0xff]   ;;  %v797_v19 = vld [vmem:[#allocation2 + $0x64] ss:$8 sps:$4 sm:$0xff]  }
  0x3d   :  { %188 = vmatprep.subr.bf16.mxu0 %v785_v5  ;;  %439 = vmatprep.subr.bf16.mxu1 %v807_v12  ;;  %v813_v20 = vld [vmem:[#allocation4 + $0x34] ss:$8 sps:$4 sm:$0xff]   ;;  %v799_v21 = vld [vmem:[#allocation2 + $0x60] ss:$8 sps:$4 sm:$0xff]   ;;  %v815_v22 = vld [vmem:[#allocation4 + $0x30] ss:$8 sps:$4 sm:$0xff]  }
  0x3e   :  { %v800_v23 = vld [vmem:[#allocation2 + $0x74] ss:$8 sps:$4 sm:$0xff]   ;;  %v816_v24 = vld [vmem:[#allocation4 + $0x44] ss:$8 sps:$4 sm:$0xff]   ;;  %v802_v25 = vld [vmem:[#allocation2 + $0x70] ss:$8 sps:$4 sm:$0xff]  }
  0x3f   :  { %v818_v26 = vld [vmem:[#allocation4 + $0x40] ss:$8 sps:$4 sm:$0xff]   ;;  %v819_v28 = vld [vmem:[#allocation4 + $0x54] ss:$8 sps:$4 sm:$0xff]   ;;  %v821_v29 = vld [vmem:[#allocation4 + $0x50] ss:$8 sps:$4 sm:$0xff]  }
  0x40   :  { %189 = vmatpush1.bf16.msra.mxu0 %v787_v6  ;;  %440 = vmatpush1.bf16.msra.mxu1 %v809_v14  ;;  %v803_v27 = vld [vmem:[%s1053_s0] sm:$0xff]   ;;  %v825_v32 = vld [vmem:[#allocation4 + $0x74] ss:$8 sps:$4 sm:$0xff]   ;;  %v827_v33 = vld [vmem:[#allocation4 + $0x70] ss:$8 sps:$4 sm:$0xff]   ;;  %v89_v62 = vshrl.u32 %v88_v61, 7 }
  0x41   :  { %190 = vmatprep.subr.bf16.mxu0 %v788_v7  ;;  %441 = vmatprep.subr.bf16.mxu1 %v810_v16  ;;  %v822_v30 = vld [vmem:[#allocation4 + $0x64] ss:$8 sps:$4 sm:$0xff]   ;;  %v824_v31 = vld [vmem:[#allocation4 + $0x60] ss:$8 sps:$4 sm:$0xff]   ;;  %v831_v36 = vld [vmem:[#allocation4 + $0x94] ss:$8 sps:$4 sm:$0xff]  }
  0x42   :  { %v828_v34 = vld [vmem:[#allocation4 + $0x84] ss:$8 sps:$4 sm:$0xff]   ;;  %v830_v35 = vld [vmem:[#allocation4 + $0x80] ss:$8 sps:$4 sm:$0xff]   ;;  %v833_v37 = vld [vmem:[#allocation4 + $0x90] ss:$8 sps:$4 sm:$0xff]  }
  0x43   :  { %v834_v38 = vld [vmem:[#allocation4 + $0xa4] ss:$8 sps:$4 sm:$0xff]   ;;  %v836_v39 = vld [vmem:[#allocation4 + $0xa0] ss:$8 sps:$4 sm:$0xff]   ;;  %v837_v40 = vld [vmem:[#allocation4 + $0xb4] ss:$8 sps:$4 sm:$0xff]  }
  0x44   :  { %191 = vmatpush1.bf16.msra.mxu0 %v790_v8  ;;  %442 = vmatpush1.bf16.msra.mxu1 %v812_v18  ;;  %v839_v41 = vld [vmem:[#allocation4 + $0xb0] ss:$8 sps:$4 sm:$0xff]   ;;  %v840_v42 = vld [vmem:[#allocation4 + $0xc4] ss:$8 sps:$4 sm:$0xff]   ;;  %v842_v43 = vld [vmem:[#allocation4 + $0xc0] ss:$8 sps:$4 sm:$0xff]  }
  0x45   :  { %192 = vmatprep.subr.bf16.mxu0 %v791_v9  ;;  %443 = vmatprep.subr.bf16.mxu1 %v813_v20  ;;  %v843_v44 = vld [vmem:[#allocation4 + $0xd4] ss:$8 sps:$4 sm:$0xff]   ;;  %v845_v45 = vld [vmem:[#allocation4 + $0xd0] ss:$8 sps:$4 sm:$0xff]   ;;  %v846_v46 = vld [vmem:[#allocation4 + $0xe4] ss:$8 sps:$4 sm:$0xff]  }
  0x46   :  { %v848_v47 = vld [vmem:[#allocation4 + $0xe0] ss:$8 sps:$4 sm:$0xff]   ;;  %v849_v48 = vld [vmem:[#allocation4 + $0xf4] ss:$8 sps:$4 sm:$0xff]   ;;  %v851_v49 = vld [vmem:[#allocation4 + $0xf0] ss:$8 sps:$4 sm:$0xff]  }
  0x47   :  { %v852_v50 = vld [vmem:[#allocation6 + $0x40] sm:$0xff]   ;;  %v854_v52 = vld [vmem:[#allocation6 + $0x48] sm:$0xff]   ;;  %v857_v55 = vld [vmem:[#allocation6 + $0x10] sm:$0xff]   ;;  %v90_v63 = vsub.s32 0, %v89_v62  ;;  %v94_v1 = vsub.s32 1, %v89_v62 }
  0x48   :  { %193 = vmatpush1.bf16.msra.mxu0 %v793_v13  ;;  %444 = vmatpush1.bf16.msra.mxu1 %v815_v22  ;;  %v853_v51 = vld [vmem:[#allocation6] sm:$0xff]   ;;  %v855_v53 = vld [vmem:[#allocation6 + $0x8] sm:$0xff]   ;;  %v858_v56 = vld [vmem:[#allocation6 + $0x58] sm:$0xff]  }
  0x49   :  { %194 = vmatprep.subr.bf16.mxu0 %v794_v15  ;;  %445 = vmatprep.subr.bf16.mxu1 %v816_v24  ;;  %v859_v57 = vld [vmem:[#allocation6 + $0x18] sm:$0xff]   ;;  %v860_v58 = vld [vmem:[#allocation6 + $0x60] sm:$0xff]   ;;  %v862_v60 = vld [vmem:[#allocation6 + $0x68] sm:$0xff]  }
  0x4a   :  { %v861_v59 = vld [vmem:[#allocation6 + $0x20] sm:$0xff]   ;;  %v863_v18 = vld [vmem:[#allocation6 + $0x28] sm:$0xff]   ;;  %v865_v20 = vld [vmem:[#allocation6 + $0x30] sm:$0xff]  }
  0x4b   :  { %v86_v0 = vld [vmem:[%s1055_s2] sm:$0x3]  ;;  %v867_v22 = vld [vmem:[#allocation6 + $0x38] sm:$0xff]  }
  0x4c   :  { %195 = vmatpush1.bf16.msra.mxu0 %v796_v17  ;;  %446 = vmatpush1.bf16.msra.mxu1 %v818_v26  ;;  %v91_v2 = vrot.slane %v86_v0, %v90_v63  ;;  %v95_v3 = vrot.slane %v86_v0, %v94_v1 }
  0x4d   :  { %196 = vmatprep.subr.bf16.mxu0 %v797_v19  ;;  %447 = vmatprep.subr.bf16.mxu1 %v819_v28  ;;  %v864_v19 = vld [vmem:[#allocation6 + $0x70] sm:$0xff]  }
  0x50   :  { %197 = vmatpush1.bf16.msra.mxu0 %v799_v21  ;;  %448 = vmatpush1.bf16.msra.mxu1 %v821_v29  ;;  %v866_v21 = vld [vmem:[#allocation6 + $0x78] sm:$0xff]  }
  0x51   :  { %198 = vmatprep.subr.bf16.mxu0 %v800_v23  ;;  %449 = vmatprep.subr.bf16.mxu1 %v822_v30  ;;  %v265_v23 = vld [vmem:[%s1057_s4] sm:$0x3] }
  0x52   :  { %v270_v24 = vrot.slane %v265_v23, %v90_v63 }
  0x54   :  { %199 = vmatpush1.bf16.msra.mxu0 %v802_v25  ;;  %450 = vmatpush1.bf16.msra.mxu1 %v824_v31  ;;  %v274_v25 = vrot.slane %v265_v23, %v94_v1 }
  0x55   :  { %451 = vmatprep.subr.bf16.mxu1 %v825_v32  ;;  %749 = vmatprep.subr.bf16.mxu0 %v852_v50 }
  0x57   :  { %217 = vmatmul.mubr.bf16.vlgmr.msra.gmra.mrb[0].mxu0 %v803_v27 }
  0x58   :  { %452 = vmatpush1.bf16.msra.mxu1 %v827_v33  ;;  %750 = vmatpush3.bf16.msra.mxu0 %v853_v51 }
  0x59   :  { %453 = vmatprep.subr.bf16.mxu1 %v828_v34  ;;  %751 = vmatprep.subr.bf16.mxu0 %v854_v52 }
  0x5c   :  { %454 = vmatpush1.bf16.msra.mxu1 %v830_v35  ;;  %752 = vmatpush3.bf16.msra.mxu0 %v855_v53 }
  0x5d   :  { %455 = vmatprep.subr.bf16.mxu1 %v831_v36  ;;  %753 = vmatprep.subr.bf16.mxu0 %v856_v54 }
  0x60   :  { %456 = vmatpush1.bf16.msra.mxu1 %v833_v37  ;;  %754 = vmatpush3.bf16.msra.mxu0 %v857_v55  ;;  %v663_v55 = vand.u32 127, %v88_v61 }
  0x61   :  { %457 = vmatprep.subr.bf16.mxu1 %v834_v38  ;;  %755 = vmatprep.subr.bf16.mxu0 %v858_v56 }
  0x62   :  { %vm672_vm0 = vcmp.ge.s32.totalorder %v663_v55, 64 }
  0x64   :  { %458 = vmatpush1.bf16.msra.mxu1 %v836_v39  ;;  %756 = vmatpush3.bf16.msra.mxu0 %v859_v57 }
  0x65   :  { %459 = vmatprep.subr.bf16.mxu1 %v837_v40  ;;  %757 = vmatprep.subr.bf16.mxu0 %v860_v58 }
  0x68   :  { %460 = vmatpush1.bf16.msra.mxu1 %v839_v41  ;;  %758 = vmatpush3.bf16.msra.mxu0 %v861_v59  ;;  %v732_v41 = vld [vmem:[%s1059_s6] ss:$0 sm:$0xff] }
  0x69   :  { %461 = vmatprep.subr.bf16.mxu1 %v840_v42  ;;  %759 = vmatprep.subr.bf16.mxu0 %v862_v60 }
  0x6c   :  { %462 = vmatpush1.bf16.msra.mxu1 %v842_v43  ;;  %760 = vmatpush3.bf16.msra.mxu0 %v863_v18 }
  0x6d   :  { %463 = vmatprep.subr.bf16.mxu1 %v843_v44  ;;  %761 = vmatprep.subr.bf16.mxu0 %v864_v19 }
  0x70   :  { %464 = vmatpush1.bf16.msra.mxu1 %v845_v45  ;;  %762 = vmatpush3.bf16.msra.mxu0 %v865_v20 }
  0x71   :  { %465 = vmatprep.subr.bf16.mxu1 %v846_v46  ;;  %763 = vmatprep.subr.bf16.mxu0 %v866_v21 }
  0x74   :  { %466 = vmatpush1.bf16.msra.mxu1 %v848_v47  ;;  %764 = vmatpush3.bf16.msra.mxu0 %v867_v22 }
  0x75   :  { %467 = vmatprep.subr.bf16.mxu1 %v849_v48 }
  0x78   :  { %468 = vmatpush1.bf16.msra.mxu1 %v851_v49 }
 0x12a   :  { %v218_v4 = vpop.f32.mrb[0].mxu0 }
 0x12b   :  { %v219_v5 = vadd.f32 %v218_v4, %v91_v2  ;;  %v220_v6 = vpop.f32.mrb[1].mxu0 }
 0x12c   :  { %v221_v7 = vadd.f32 %v220_v6, %v95_v3  ;;  %v222_v8 = vpop.f32.mrb[2].mxu0 }
 0x12d   :  { %v223_v9 = vadd.f32 %v222_v8, %v91_v2  ;;  %v224_v10 = vpop.f32.mrb[3].mxu0  ;;  %v227_v12 = vmax.f32 %v219_v5, 0.0 }
 0x12e   :  { %v225_v11 = vadd.f32 %v224_v10, %v95_v3  ;;  %v228_v14 = vmax.f32 %v221_v7, 0.0 }
 0x12f   :  { %v229_v13 = vmax.f32 %v223_v9, 0.0 }
 0x130   :  { %v230_v15 = vmax.f32 %v225_v11, 0.0 }
 0x131   :  { %v231_v16 = vpack.c.bf16 %v229_v13, %v227_v12 }
 0x132   :  { %v232_v17 = vpack.c.bf16 %v230_v15, %v228_v14 }
 0x134   :  { %469 = vmatprep.mubr.bf16.mxu1 %v232_v17 }
 0x135   :  { %470 = vmatmul.mubr.bf16.vlgmr.msra.gmra.mrb[0].mxu1 %v231_v16 }
 0x208   :  { %v471_v26 = vpop.f32.mrb[0].mxu1 }
 0x209   :  { %v472_v27 = vadd.f32 %v471_v26, %v270_v24  ;;  %v473_v28 = vpop.f32.mrb[1].mxu1 }
 0x20a   :  { %v474_v29 = vadd.f32 %v473_v28, %v274_v25  ;;  %v475_v30 = vpop.f32.mrb[2].mxu1 }
 0x20b   :  { %v476_v31 = vadd.f32 %v475_v30, %v270_v24  ;;  %v477_v32 = vpop.f32.mrb[3].mxu1  ;;  %v480_v34 = vmax.f32 %v472_v27, 0.0 }
 0x20c   :  { %v478_v33 = vadd.f32 %v477_v32, %v274_v25  ;;  %v481_v36 = vmax.f32 %v474_v29, 0.0 }
 0x20d   :  { %v482_v35 = vmax.f32 %v476_v31, 0.0 }
 0x20e   :  { %v483_v37 = vmax.f32 %v478_v33, 0.0 }
 0x20f   :  { %v484_v38 = vpack.c.bf16 %v482_v35, %v480_v34 }
 0x210   :  { %v485_v39 = vpack.c.bf16 %v483_v37, %v481_v36 }
 0x212   :  { %653 = vmatprep.mubr.bf16.mxu0 %v485_v39 }
 0x213   :  { %654 = vmatmul.mubr.bf16.vlgmr.msra.gmra.mrb[4].mxu0 %v484_v38 }
 0x2e6   :  { %v765_v40 = vpop.f32.mrb[4].mxu0 }
 0x2e7   :  { %v766_v42 = vpop.f32.mrb[5].mxu0 }
 0x2e8   :  { %v767_v43 = vadd.f32 %v766_v42, %v765_v40  ;;  %v768_v44 = vpop.f32.mrb[6].mxu0 }
 0x2e9   :  { %v769_v45 = vpop.f32.mrb[7].mxu0 }
 0x2ea   :  { %v656_v46 = vadd.f32 %v767_v43, %v732_v41  ;;  %v770_v47 = vadd.f32 %v769_v45, %v768_v44 }
 0x2ec   :  { %v664_v48 = vmax.f32 %v656_v46, 1e-06  ;;  %v659_v49 = vadd.f32 %v770_v47, %v732_v41 }
 0x2ee   :  { %v666_v50 = vmin.f32 %v664_v48, 2.0  ;;  %v665_v51 = vmax.f32 %v659_v49, 1e-06 }
 0x2f0   :  { %v668_v52 = vmul.f32 1.442695, %v666_v50  ;;  %v667_v53 = vmin.f32 %v665_v51, 2.0 }
 0x2f2   :  { %868 = vpow2.f32 %v668_v52  ;;  %v670_v54 = vmul.f32 1.442695, %v667_v53 }
 0x2f4   :  { %870 = vpow2.f32 %v670_v54 }
 0x2fc   :  { %v869_v56 = vpop.eup %868 }
 0x2fd   :  { %v673_v57 = vsel %vm672_vm0, %v869_v56, %v656_v46 }
 0x2fe   :  { %v871_v58 = vpop.eup %870  ;;  %675 = vst [vmem:[%s1060_s7] sm:$0xff] %v673_v57 }
 0x2ff   :  { %v674_v59 = vsel %vm672_vm0, %v871_v58, %v659_v49 }
 0x300   :  { %676 = vst [vmem:[%s1060_s7 + $0x8] sm:$0xff] %v674_v59 }
 0x301   :  { %681 = vsyncpa [#allocation3], 1 }
 0x302   :  { %682 = vsyncpa [#allocation5], 1 }

// kernel: actor_forward.1
= control target key start
LH: loop header
LB: loop body
LE: loop exit
PB: predicated region body
PF: predicated region fallthrough
CT: control target
= control target key end

     0   :  { %12 = vsyncpa [#allocation3], 0  ;;  %s1053_s0 = inlined_call_operand.vmem [shape: bf16[16,128], index: 0, kind: input, shape index: {}]   ;;  %s1054_s1 = inlined_call_operand.hbm [shape: bf16[128,256], index: 1, kind: input, shape index: {}]   ;;  %s1055_s2 = inlined_call_operand.vmem [shape: f32[1,256], index: 2, kind: input, shape index: {}]   ;;  %s1056_s3 = inlined_call_operand.hbm [shape: bf16[256,256], index: 3, kind: input, shape index: {}]   ;;  %s1057_s4 = inlined_call_operand.vmem [shape: f32[1,256], index: 4, kind: input, shape index: {}]   ;;  %s1058_s5 = inlined_call_operand.hbm [shape: bf16[256,128], index: 5, kind: input, shape index: {}]   ;;  %s1059_s6 = inlined_call_operand.vmem [shape: f32[1,128], index: 6, kind: input, shape index: {}]   ;;  %s1060_s7 = inlined_call_operand.vmem [shape: f32[16,128], index: 7, kind: output, shape index: {}]  }
   0x1   :  { %13 = vsyncpa [#allocation5], 0  ;;  %s942_s24 = smov [#allocation4]   ;;  %s943_s26 = smov [#allocation2]  }
   0x2   :  { %s35_s25 = sshll.u32 %s942_s24, 4  ;;  %s21_s27 = sshll.u32 %s943_s26, 4  ;;  %s36_s25 = int_to_ptr.vmem [resolvable:$true] %s35_s25  ;;  %s990_s27 = int_to_ptr.vmem [resolvable:$true] %s21_s27 }
   0x3   :  { %s872_s30 = scalar_lea.hbm %s1056_s3, 4096 }
   0x4   :  { %p873_p0 = scmp.ne.s32.totalorder %s1056_s3, %s872_s30  ;;  %p876_p1 = scmp.lt.u32.totalorder %s872_s30, %s1056_s3 }
   0x6   :  { %p878_p2 = pnand %p876_p1, %p873_p0 }
   0x8   :  { %881 = shalt.err (!%p878_p2)
}
   0x9   :  { %s882_s12 = scalar_lea.vmem %s36_s25, 4096  ;;  %p887_p4 = scmp.lt.s32.totalorder %s36_s25, %s36_s25 }
   0xa   :  { %p883_p3 = scmp.ne.s32.totalorder %s36_s25, %s882_s12  ;;  %p888_p5 = scmp.lt.s32.totalorder %s882_s12, %s882_s12 }
   0xc   :  { %p889_p6 = por %p888_p5, %p887_p4 }
   0xe   :  { %p890_p7 = pnand %p889_p6, %p883_p3 }
  0x10   :  { %893 = shalt.err (!%p890_p7)
}
  0x11   :  { %s944_s13 = smov 128   ;;  %s945_s14 = smov 8  }
  0x12   :  { %41 = dma.hbm_to_vmem [thread:$0]  %s1056_s3, 4096, %s36_s25, [#allocation5], %s944_s13, %s944_s13, %s945_s14  }
  0x13   :  { %s894_s19 = scalar_lea.hbm %s1054_s1, 2048 }
  0x14   :  { %p895_p8 = scmp.ne.s32.totalorder %s1054_s1, %s894_s19  ;;  %p898_p9 = scmp.lt.u32.totalorder %s894_s19, %s1054_s1 }
  0x16   :  { %p900_p10 = pnand %p898_p9, %p895_p8 }
  0x18   :  { %903 = shalt.err (!%p900_p10)
}
  0x19   :  { %s904_s24 = scalar_lea.vmem %s990_s27, 2048  ;;  %p909_p12 = scmp.lt.s32.totalorder %s990_s27, %s990_s27 }
  0x1a   :  { %p905_p11 = scmp.ne.s32.totalorder %s990_s27, %s904_s24  ;;  %p910_p13 = scmp.lt.s32.totalorder %s904_s24, %s904_s24 }
  0x1c   :  { %p911_p0 = por %p910_p13, %p909_p12 }
  0x1e   :  { %p912_p1 = pnand %p911_p0, %p905_p11 }
  0x20   :  { %915 = shalt.err (!%p912_p1)
}
  0x21   :  { %27 = dma.hbm_to_vmem [thread:$0]  %s1054_s1, 2048, %s990_s27, [#allocation3], %s944_s13, %s944_s13, %s945_s14  }
  0x22   :  { %s946_s26 = smov [#allocation6]   ;;  %s916_s8 = scalar_lea.hbm %s1058_s5, 2048 }
  0x23   :  { %s49_s28 = sshll.u32 %s946_s26, 4  ;;  %p917_p2 = scmp.ne.s32.totalorder %s1058_s5, %s916_s8  ;;  %s50_s28 = int_to_ptr.vmem [resolvable:$true] %s49_s28 }
  0x24   :  { %p920_p3 = scmp.lt.u32.totalorder %s916_s8, %s1058_s5 }
  0x26   :  { %p922_p4 = pnand %p920_p3, %p917_p2 }
  0x28   :  { %925 = shalt.err (!%p922_p4)
}
  0x29   :  { %s926_s15 = scalar_lea.vmem %s50_s28, 2048  ;;  %p931_p6 = scmp.lt.s32.totalorder %s50_s28, %s50_s28 }
  0x2a   :  { %p927_p5 = scmp.ne.s32.totalorder %s50_s28, %s926_s15  ;;  %p932_p7 = scmp.lt.s32.totalorder %s926_s15, %s926_s15 }
  0x2c   :  { %p933_p8 = por %p932_p7, %p931_p6 }
  0x2e   :  { %p934_p9 = pnand %p933_p8, %p927_p5 }
  0x30   :  { %937 = shalt.err (!%p934_p9)
}
  0x31   :  { %s947_s1 = smov 64   ;;  %s948_s27 = smov 4  }
  0x32   :  { %55 = dma.hbm_to_vmem [thread:$0]  %s1058_s5, 2048, %s50_s28, [#allocation5], %s947_s1, %s947_s1, %s948_s27  }
  0x33   :  { %938 = dma.done.wait [#allocation3], 2048  }
  0x34   :  { %939 = vsyncadd [#allocation3], 4294965248 }
  0x35   :  { %940 = dma.done.wait [#allocation5], 6144  }
  0x36   :  { %941 = vsyncadd [#allocation5], 4294961152  ;;  %v949_v0 = vmov 0   ;;  %v779_v1 = vld [vmem:[#allocation2 + $0x4] ss:$8 sps:$4 sm:$0xff]   ;;  %v856_v54 = vld [vmem:[#allocation6 + $0x50] sm:$0xff]   ;;  %v88_v61 = vlaneseq }
  0x37   :  { %216 = vmatprep.mubr.bf16.mxu0 %v949_v0  ;;  %v781_v2 = vld [vmem:[#allocation2] ss:$8 sps:$4 sm:$0xff]   ;;  %184 = vmatprep.subr.bf16.mxu0 %v779_v1  ;;  %v782_v3 = vld [vmem:[#allocation2 + $0x14] ss:$8 sps:$4 sm:$0xff]   ;;  %v784_v4 = vld [vmem:[#allocation2 + $0x10] ss:$8 sps:$4 sm:$0xff]  }
  0x38   :  { %185 = vmatpush1.bf16.msra.mxu0 %v781_v2  ;;  %v785_v5 = vld [vmem:[#allocation2 + $0x24] ss:$8 sps:$4 sm:$0xff]   ;;  %v787_v6 = vld [vmem:[#allocation2 + $0x20] ss:$8 sps:$4 sm:$0xff]   ;;  %v788_v7 = vld [vmem:[#allocation2 + $0x34] ss:$8 sps:$4 sm:$0xff]  }
  0x39   :  { %186 = vmatprep.subr.bf16.mxu0 %v782_v3  ;;  %v790_v8 = vld [vmem:[#allocation2 + $0x30] ss:$8 sps:$4 sm:$0xff]   ;;  %v791_v9 = vld [vmem:[#allocation2 + $0x44] ss:$8 sps:$4 sm:$0xff]   ;;  %v806_v11 = vld [vmem:[#allocation4] ss:$8 sps:$4 sm:$0xff]  }
  0x3a   :  { %v804_v10 = vld [vmem:[#allocation4 + $0x4] ss:$8 sps:$4 sm:$0xff]   ;;  %v807_v12 = vld [vmem:[#allocation4 + $0x14] ss:$8 sps:$4 sm:$0xff]   ;;  %v793_v13 = vld [vmem:[#allocation2 + $0x40] ss:$8 sps:$4 sm:$0xff]  }
  0x3b   :  { %437 = vmatprep.subr.bf16.mxu1 %v804_v10  ;;  %v809_v14 = vld [vmem:[#allocation4 + $0x10] ss:$8 sps:$4 sm:$0xff]   ;;  %v794_v15 = vld [vmem:[#allocation2 + $0x54] ss:$8 sps:$4 sm:$0xff]   ;;  %v810_v16 = vld [vmem:[#allocation4 + $0x24] ss:$8 sps:$4 sm:$0xff]  }
  0x3c   :  { %187 = vmatpush1.bf16.msra.mxu0 %v784_v4  ;;  %438 = vmatpush1.bf16.msra.mxu1 %v806_v11  ;;  %v796_v17 = vld [vmem:[#allocation2 + $0x50] ss:$8 sps:$4 sm:$0xff]   ;;  %v812_v18 = vld [vmem:[#allocation4 + $0x20] ss:$8 sps:$4 sm:$0xff]   ;;  %v797_v19 = vld [vmem:[#allocation2 + $0x64] ss:$8 sps:$4 sm:$0xff]  }
  0x3d   :  { %188 = vmatprep.subr.bf16.mxu0 %v785_v5  ;;  %439 = vmatprep.subr.bf16.mxu1 %v807_v12  ;;  %v813_v20 = vld [vmem:[#allocation4 + $0x34] ss:$8 sps:$4 sm:$0xff]   ;;  %v799_v21 = vld [vmem:[#allocation2 + $0x60] ss:$8 sps:$4 sm:$0xff]   ;;  %v815_v22 = vld [vmem:[#allocation4 + $0x30] ss:$8 sps:$4 sm:$0xff]  }
  0x3e   :  { %v800_v23 = vld [vmem:[#allocation2 + $0x74] ss:$8 sps:$4 sm:$0xff]   ;;  %v816_v24 = vld [vmem:[#allocation4 + $0x44] ss:$8 sps:$4 sm:$0xff]   ;;  %v802_v25 = vld [vmem:[#allocation2 + $0x70] ss:$8 sps:$4 sm:$0xff]  }
  0x3f   :  { %v818_v26 = vld [vmem:[#allocation4 + $0x40] ss:$8 sps:$4 sm:$0xff]   ;;  %v819_v28 = vld [vmem:[#allocation4 + $0x54] ss:$8 sps:$4 sm:$0xff]   ;;  %v821_v29 = vld [vmem:[#allocation4 + $0x50] ss:$8 sps:$4 sm:$0xff]  }
  0x40   :  { %189 = vmatpush1.bf16.msra.mxu0 %v787_v6  ;;  %440 = vmatpush1.bf16.msra.mxu1 %v809_v14  ;;  %v803_v27 = vld [vmem:[%s1053_s0] sm:$0xff]   ;;  %v825_v32 = vld [vmem:[#allocation4 + $0x74] ss:$8 sps:$4 sm:$0xff]   ;;  %v827_v33 = vld [vmem:[#allocation4 + $0x70] ss:$8 sps:$4 sm:$0xff]   ;;  %v89_v62 = vshrl.u32 %v88_v61, 7 }
  0x41   :  { %190 = vmatprep.subr.bf16.mxu0 %v788_v7  ;;  %441 = vmatprep.subr.bf16.mxu1 %v810_v16  ;;  %v822_v30 = vld [vmem:[#allocation4 + $0x64] ss:$8 sps:$4 sm:$0xff]   ;;  %v824_v31 = vld [vmem:[#allocation4 + $0x60] ss:$8 sps:$4 sm:$0xff]   ;;  %v831_v36 = vld [vmem:[#allocation4 + $0x94] ss:$8 sps:$4 sm:$0xff]  }
  0x42   :  { %v828_v34 = vld [vmem:[#allocation4 + $0x84] ss:$8 sps:$4 sm:$0xff]   ;;  %v830_v35 = vld [vmem:[#allocation4 + $0x80] ss:$8 sps:$4 sm:$0xff]   ;;  %v833_v37 = vld [vmem:[#allocation4 + $0x90] ss:$8 sps:$4 sm:$0xff]  }
  0x43   :  { %v834_v38 = vld [vmem:[#allocation4 + $0xa4] ss:$8 sps:$4 sm:$0xff]   ;;  %v836_v39 = vld [vmem:[#allocation4 + $0xa0] ss:$8 sps:$4 sm:$0xff]   ;;  %v837_v40 = vld [vmem:[#allocation4 + $0xb4] ss:$8 sps:$4 sm:$0xff]  }
  0x44   :  { %191 = vmatpush1.bf16.msra.mxu0 %v790_v8  ;;  %442 = vmatpush1.bf16.msra.mxu1 %v812_v18  ;;  %v839_v41 = vld [vmem:[#allocation4 + $0xb0] ss:$8 sps:$4 sm:$0xff]   ;;  %v840_v42 = vld [vmem:[#allocation4 + $0xc4] ss:$8 sps:$4 sm:$0xff]   ;;  %v842_v43 = vld [vmem:[#allocation4 + $0xc0] ss:$8 sps:$4 sm:$0xff]  }
  0x45   :  { %192 = vmatprep.subr.bf16.mxu0 %v791_v9  ;;  %443 = vmatprep.subr.bf16.mxu1 %v813_v20  ;;  %v843_v44 = vld [vmem:[#allocation4 + $0xd4] ss:$8 sps:$4 sm:$0xff]   ;;  %v845_v45 = vld [vmem:[#allocation4 + $0xd0] ss:$8 sps:$4 sm:$0xff]   ;;  %v846_v46 = vld [vmem:[#allocation4 + $0xe4] ss:$8 sps:$4 sm:$0xff]  }
  0x46   :  { %v848_v47 = vld [vmem:[#allocation4 + $0xe0] ss:$8 sps:$4 sm:$0xff]   ;;  %v849_v48 = vld [vmem:[#allocation4 + $0xf4] ss:$8 sps:$4 sm:$0xff]   ;;  %v851_v49 = vld [vmem:[#allocation4 + $0xf0] ss:$8 sps:$4 sm:$0xff]  }
  0x47   :  { %v852_v50 = vld [vmem:[#allocation6 + $0x40] sm:$0xff]   ;;  %v854_v52 = vld [vmem:[#allocation6 + $0x48] sm:$0xff]   ;;  %v857_v55 = vld [vmem:[#allocation6 + $0x10] sm:$0xff]   ;;  %v90_v63 = vsub.s32 0, %v89_v62  ;;  %v94_v1 = vsub.s32 1, %v89_v62 }
  0x48   :  { %193 = vmatpush1.bf16.msra.mxu0 %v793_v13  ;;  %444 = vmatpush1.bf16.msra.mxu1 %v815_v22  ;;  %v853_v51 = vld [vmem:[#allocation6] sm:$0xff]   ;;  %v855_v53 = vld [vmem:[#allocation6 + $0x8] sm:$0xff]   ;;  %v858_v56 = vld [vmem:[#allocation6 + $0x58] sm:$0xff]  }
  0x49   :  { %194 = vmatprep.subr.bf16.mxu0 %v794_v15  ;;  %445 = vmatprep.subr.bf16.mxu1 %v816_v24  ;;  %v859_v57 = vld [vmem:[#allocation6 + $0x18] sm:$0xff]   ;;  %v860_v58 = vld [vmem:[#allocation6 + $0x60] sm:$0xff]   ;;  %v862_v60 = vld [vmem:[#allocation6 + $0x68] sm:$0xff]  }
  0x4a   :  { %v861_v59 = vld [vmem:[#allocation6 + $0x20] sm:$0xff]   ;;  %v863_v18 = vld [vmem:[#allocation6 + $0x28] sm:$0xff]   ;;  %v865_v20 = vld [vmem:[#allocation6 + $0x30] sm:$0xff]  }
  0x4b   :  { %v86_v0 = vld [vmem:[%s1055_s2] sm:$0x3]  ;;  %v867_v22 = vld [vmem:[#allocation6 + $0x38] sm:$0xff]  }
  0x4c   :  { %195 = vmatpush1.bf16.msra.mxu0 %v796_v17  ;;  %446 = vmatpush1.bf16.msra.mxu1 %v818_v26  ;;  %v91_v2 = vrot.slane %v86_v0, %v90_v63  ;;  %v95_v3 = vrot.slane %v86_v0, %v94_v1 }
  0x4d   :  { %196 = vmatprep.subr.bf16.mxu0 %v797_v19  ;;  %447 = vmatprep.subr.bf16.mxu1 %v819_v28  ;;  %v864_v19 = vld [vmem:[#allocation6 + $0x70] sm:$0xff]  }
  0x50   :  { %197 = vmatpush1.bf16.msra.mxu0 %v799_v21  ;;  %448 = vmatpush1.bf16.msra.mxu1 %v821_v29  ;;  %v866_v21 = vld [vmem:[#allocation6 + $0x78] sm:$0xff]  }
  0x51   :  { %198 = vmatprep.subr.bf16.mxu0 %v800_v23  ;;  %449 = vmatprep.subr.bf16.mxu1 %v822_v30  ;;  %v265_v23 = vld [vmem:[%s1057_s4] sm:$0x3] }
  0x52   :  { %v270_v24 = vrot.slane %v265_v23, %v90_v63 }
  0x54   :  { %199 = vmatpush1.bf16.msra.mxu0 %v802_v25  ;;  %450 = vmatpush1.bf16.msra.mxu1 %v824_v31  ;;  %v274_v25 = vrot.slane %v265_v23, %v94_v1 }
  0x55   :  { %451 = vmatprep.subr.bf16.mxu1 %v825_v32  ;;  %749 = vmatprep.subr.bf16.mxu0 %v852_v50 }
  0x57   :  { %217 = vmatmul.mubr.bf16.vlgmr.msra.gmra.mrb[0].mxu0 %v803_v27 }
  0x58   :  { %452 = vmatpush1.bf16.msra.mxu1 %v827_v33  ;;  %750 = vmatpush3.bf16.msra.mxu0 %v853_v51 }
  0x59   :  { %453 = vmatprep.subr.bf16.mxu1 %v828_v34  ;;  %751 = vmatprep.subr.bf16.mxu0 %v854_v52 }
  0x5c   :  { %454 = vmatpush1.bf16.msra.mxu1 %v830_v35  ;;  %752 = vmatpush3.bf16.msra.mxu0 %v855_v53 }
  0x5d   :  { %455 = vmatprep.subr.bf16.mxu1 %v831_v36  ;;  %753 = vmatprep.subr.bf16.mxu0 %v856_v54 }
  0x60   :  { %456 = vmatpush1.bf16.msra.mxu1 %v833_v37  ;;  %754 = vmatpush3.bf16.msra.mxu0 %v857_v55  ;;  %v663_v55 = vand.u32 127, %v88_v61 }
  0x61   :  { %457 = vmatprep.subr.bf16.mxu1 %v834_v38  ;;  %755 = vmatprep.subr.bf16.mxu0 %v858_v56 }
  0x62   :  { %vm672_vm0 = vcmp.ge.s32.totalorder %v663_v55, 64 }
  0x64   :  { %458 = vmatpush1.bf16.msra.mxu1 %v836_v39  ;;  %756 = vmatpush3.bf16.msra.mxu0 %v859_v57 }
  0x65   :  { %459 = vmatprep.subr.bf16.mxu1 %v837_v40  ;;  %757 = vmatprep.subr.bf16.mxu0 %v860_v58 }
  0x68   :  { %460 = vmatpush1.bf16.msra.mxu1 %v839_v41  ;;  %758 = vmatpush3.bf16.msra.mxu0 %v861_v59  ;;  %v732_v41 = vld [vmem:[%s1059_s6] ss:$0 sm:$0xff] }
  0x69   :  { %461 = vmatprep.subr.bf16.mxu1 %v840_v42  ;;  %759 = vmatprep.subr.bf16.mxu0 %v862_v60 }
  0x6c   :  { %462 = vmatpush1.bf16.msra.mxu1 %v842_v43  ;;  %760 = vmatpush3.bf16.msra.mxu0 %v863_v18 }
  0x6d   :  { %463 = vmatprep.subr.bf16.mxu1 %v843_v44  ;;  %761 = vmatprep.subr.bf16.mxu0 %v864_v19 }
  0x70   :  { %464 = vmatpush1.bf16.msra.mxu1 %v845_v45  ;;  %762 = vmatpush3.bf16.msra.mxu0 %v865_v20 }
  0x71   :  { %465 = vmatprep.subr.bf16.mxu1 %v846_v46  ;;  %763 = vmatprep.subr.bf16.mxu0 %v866_v21 }
  0x74   :  { %466 = vmatpush1.bf16.msra.mxu1 %v848_v47  ;;  %764 = vmatpush3.bf16.msra.mxu0 %v867_v22 }
  0x75   :  { %467 = vmatprep.subr.bf16.mxu1 %v849_v48 }
  0x78   :  { %468 = vmatpush1.bf16.msra.mxu1 %v851_v49 }
 0x12a   :  { %v218_v4 = vpop.f32.mrb[0].mxu0 }
 0x12b   :  { %v219_v5 = vadd.f32 %v218_v4, %v91_v2  ;;  %v220_v6 = vpop.f32.mrb[1].mxu0 }
 0x12c   :  { %v221_v7 = vadd.f32 %v220_v6, %v95_v3  ;;  %v222_v8 = vpop.f32.mrb[2].mxu0 }
 0x12d   :  { %v223_v9 = vadd.f32 %v222_v8, %v91_v2  ;;  %v224_v10 = vpop.f32.mrb[3].mxu0  ;;  %v227_v12 = vmax.f32 %v219_v5, 0.0 }
 0x12e   :  { %v225_v11 = vadd.f32 %v224_v10, %v95_v3  ;;  %v228_v14 = vmax.f32 %v221_v7, 0.0 }
 0x12f   :  { %v229_v13 = vmax.f32 %v223_v9, 0.0 }
 0x130   :  { %v230_v15 = vmax.f32 %v225_v11, 0.0 }
 0x131   :  { %v231_v16 = vpack.c.bf16 %v229_v13, %v227_v12 }
 0x132   :  { %v232_v17 = vpack.c.bf16 %v230_v15, %v228_v14 }
 0x134   :  { %469 = vmatprep.mubr.bf16.mxu1 %v232_v17 }
 0x135   :  { %470 = vmatmul.mubr.bf16.vlgmr.msra.gmra.mrb[0].mxu1 %v231_v16 }
 0x208   :  { %v471_v26 = vpop.f32.mrb[0].mxu1 }
 0x209   :  { %v472_v27 = vadd.f32 %v471_v26, %v270_v24  ;;  %v473_v28 = vpop.f32.mrb[1].mxu1 }
 0x20a   :  { %v474_v29 = vadd.f32 %v473_v28, %v274_v25  ;;  %v475_v30 = vpop.f32.mrb[2].mxu1 }
 0x20b   :  { %v476_v31 = vadd.f32 %v475_v30, %v270_v24  ;;  %v477_v32 = vpop.f32.mrb[3].mxu1  ;;  %v480_v34 = vmax.f32 %v472_v27, 0.0 }
 0x20c   :  { %v478_v33 = vadd.f32 %v477_v32, %v274_v25  ;;  %v481_v36 = vmax.f32 %v474_v29, 0.0 }
 0x20d   :  { %v482_v35 = vmax.f32 %v476_v31, 0.0 }
 0x20e   :  { %v483_v37 = vmax.f32 %v478_v33, 0.0 }
 0x20f   :  { %v484_v38 = vpack.c.bf16 %v482_v35, %v480_v34 }
 0x210   :  { %v485_v39 = vpack.c.bf16 %v483_v37, %v481_v36 }
 0x212   :  { %653 = vmatprep.mubr.bf16.mxu0 %v485_v39 }
 0x213   :  { %654 = vmatmul.mubr.bf16.vlgmr.msra.gmra.mrb[4].mxu0 %v484_v38 }
 0x2e6   :  { %v765_v40 = vpop.f32.mrb[4].mxu0 }
 0x2e7   :  { %v766_v42 = vpop.f32.mrb[5].mxu0 }
 0x2e8   :  { %v767_v43 = vadd.f32 %v766_v42, %v765_v40  ;;  %v768_v44 = vpop.f32.mrb[6].mxu0 }
 0x2e9   :  { %v769_v45 = vpop.f32.mrb[7].mxu0 }
 0x2ea   :  { %v656_v46 = vadd.f32 %v767_v43, %v732_v41  ;;  %v770_v47 = vadd.f32 %v769_v45, %v768_v44 }
 0x2ec   :  { %v664_v48 = vmax.f32 %v656_v46, 1e-06  ;;  %v659_v49 = vadd.f32 %v770_v47, %v732_v41 }
 0x2ee   :  { %v666_v50 = vmin.f32 %v664_v48, 2.0  ;;  %v665_v51 = vmax.f32 %v659_v49, 1e-06 }
 0x2f0   :  { %v668_v52 = vmul.f32 1.442695, %v666_v50  ;;  %v667_v53 = vmin.f32 %v665_v51, 2.0 }
 0x2f2   :  { %868 = vpow2.f32 %v668_v52  ;;  %v670_v54 = vmul.f32 1.442695, %v667_v53 }
 0x2f4   :  { %870 = vpow2.f32 %v670_v54 }
 0x2fc   :  { %v869_v56 = vpop.eup %868 }
 0x2fd   :  { %v673_v57 = vsel %vm672_vm0, %v869_v56, %v656_v46 }
 0x2fe   :  { %v871_v58 = vpop.eup %870  ;;  %675 = vst [vmem:[%s1060_s7] sm:$0xff] %v673_v57 }
 0x2ff   :  { %v674_v59 = vsel %vm672_vm0, %v871_v58, %v659_v49 }
 0x300   :  { %676 = vst [vmem:[%s1060_s7 + $0x8] sm:$0xff] %v674_v59 }
 0x301   :  { %681 = vsyncpa [#allocation3], 1 }
 0x302   :  { %682 = vsyncpa [#allocation5], 1 }

</bundles_post_ra>
